<compile_context>
chip_gen: v7x
topology: tpu7x:2x2x1
jax: 0.10.0
libtpu: 0.0.40
codegen_flags: <defaults>
</compile_context>

<pallas_src>
import functools

import jax
import jax.numpy as jnp
from jax import lax
from jax.experimental import pallas as pl
from jax.experimental.pallas import tpu as pltpu


def basic_block_kernel(x_ref, w_ref, sb_ref, o_ref, *, img_rows):
    """One block of stacked image rows per grid step.

    x_ref : (Mb, W*C)          lane-dense activations; Mb = Nb images * H rows
    w_ref : (2, 3*W*C, W*C)    K-concatenated banded 3x3 weights (conv1, conv2)
    sb_ref: (4, W*C)           lane-tiled [scale1, bias1, scale2, bias2] (f32)
    o_ref : (Mb, W*C)          lane-dense output
    """
    Mb, WC = x_ref.shape
    H = img_rows
    cdt = w_ref.dtype                       # MXU operand dtype (f32 or bf16)

    xin = x_ref[...]                        # (Mb, WC) f32

    # Per-row masks: the dy=0 / dy=2 row-shifted terms must not cross image
    # boundaries inside the stacked block -> this implements the 1-row zero
    # padding in the y direction without any padded scratch buffer.
    rr = lax.broadcasted_iota(jnp.int32, (Mb, 1), 0) % H
    not_top = rr != 0                       # row 0 of each image: no dy=0 term
    not_bot = rr != (H - 1)                 # last row of each image: no dy=2
    zrow = jnp.zeros((1, WC), jnp.float32)

    def conv3x3(a, wi):
        # a: (Mb, WC) f32.  Build the K = 3*WC operand [rows-1 | rows | rows+1]
        # (shift/mask in f32; only the MXU operand is cast to `cdt`).
        up = jnp.where(not_top,
                       jnp.concatenate([zrow, a[:-1, :]], axis=0), 0.0)
        dn = jnp.where(not_bot,
                       jnp.concatenate([a[1:, :], zrow], axis=0), 0.0)
        s = jnp.concatenate([up, a, dn], axis=1).astype(cdt)     # (Mb, 3*WC)
        return jnp.dot(s, w_ref[wi], preferred_element_type=jnp.float32)

    # conv1 -> BN1 -> ReLU (f32 epilogue)
    a1 = conv3x3(xin, 0)
    h1 = jnp.maximum(a1 * sb_ref[0:1, :] + sb_ref[1:2, :], 0.0)

    # conv2 (h1 fed straight from vregs) -> BN2 -> residual add -> ReLU
    a2 = conv3x3(h1, 1)
    o_ref[...] = jnp.maximum(a2 * sb_ref[2:3, :] + sb_ref[3:4, :] + xin, 0.0)


def _fuse_bn(gamma, beta, mean, var, eps):
    scale = gamma / jnp.sqrt(var + eps)
    bias = beta - mean * scale
    return scale.astype(jnp.float32), bias.astype(jnp.float32)


def _band_weights(w_oihw, W):
    """OIHW 3x3 weights -> banded (3, W*Cin, W*Cout) matrices, one per dy.

    big[dy, p*Cin+ci, x*Cout+co] = w[dy, p-x+1, ci, co] if p-x+1 in {0,1,2}
                                   else 0
    The dx edge truncation (left/right zero padding) is folded into the band,
    so the contraction dim is exactly W*Cin (no padded columns).
    """
    Cout, Cin, KH, KW = w_oihw.shape
    assert (KH, KW) == (3, 3)
    w = jnp.transpose(w_oihw, (2, 3, 1, 0)).astype(jnp.float32)  # (dy,dx,ci,co)
    # E[dx, p, x] = 1  iff  p == x + dx - 1  (truncated at the edges)
    E = jnp.stack([jnp.eye(W, k=1, dtype=jnp.float32),
                   jnp.eye(W, k=0, dtype=jnp.float32),
                   jnp.eye(W, k=-1, dtype=jnp.float32)], axis=0)  # (3, W, W)
    big = jnp.einsum('dpx,ydio->ypixo', E, w)       # (dy, p, ci, x, co)
    return big.reshape(3, W * Cin, W * Cout)


@functools.partial(jax.jit,
                   static_argnames=("eps", "block_images", "compute_dtype"))
def basic_block_pallas(x_nchw, w1_oihw, bn1, w2_oihw, bn2, eps=1e-5,
                       block_images=8, compute_dtype=jnp.float32):
    """BasicBlock forward. x_nchw: (N, C, H, W); weights OIHW (PyTorch layout)."""
    N, C, H, W = x_nchw.shape
    Cout = w1_oihw.shape[0]
    # stride=1, downsample=None  =>  planes == inplanes
    assert w1_oihw.shape == (Cout, C, 3, 3) and Cout == C
    assert w2_oihw.shape == (Cout, Cout, 3, 3)

    WC = W * C
    Nb = max(1, min(int(block_images), N))          # images per grid step
    assert (Nb * H) % 8 == 0, "block rows must satisfy (8,128) tiling"
    G = -(-N // Nb)                                 # grid steps
    Npad = G * Nb
    MB = Nb * H                                     # matmul M rows per step

    # lane-dense activations: rows = stacked image rows, lanes = W*C
    x_rows = jnp.transpose(x_nchw, (0, 2, 3, 1)).astype(jnp.float32)
    x_rows = x_rows.reshape(N * H, WC)
    if Npad != N:
        x_rows = jnp.pad(x_rows, ((0, (Npad - N) * H), (0, 0)))

    # banded weights, dy windows concatenated along K -> (2, 3*WC, WC)
    wcat = jnp.stack(
        [_band_weights(w1_oihw, W).reshape(3 * WC, WC),
         _band_weights(w2_oihw, W).reshape(3 * WC, WC)],
        axis=0).astype(compute_dtype)

    # fused BN scale/bias, tiled to lane width, packed into one f32 array
    s1, b1 = _fuse_bn(*bn1, eps)
    s2, b2 = _fuse_bn(*bn2, eps)
    sb = jnp.stack([jnp.tile(s1, W), jnp.tile(b1, W),
                    jnp.tile(s2, W), jnp.tile(b2, W)], axis=0)    # (4, WC)

    out_rows = pl.pallas_call(
        functools.partial(basic_block_kernel, img_rows=H),
        out_shape=jax.ShapeDtypeStruct((Npad * H, WC), jnp.float32),
        grid_spec=pltpu.PrefetchScalarGridSpec(
            num_scalar_prefetch=0,
            grid=(G,),
            in_specs=[
                pl.BlockSpec((MB, WC), lambda i: (i, 0)),
                pl.BlockSpec((2, 3 * WC, WC), lambda i: (0, 0, 0)),
                pl.BlockSpec((4, WC), lambda i: (0, 0)),
            ],
            out_specs=pl.BlockSpec((MB, WC), lambda i: (i, 0)),
        ),
        compiler_params=pltpu.CompilerParams(
            dimension_semantics=("parallel",)),
    )(x_rows, wcat, sb)

    out = out_rows[: N * H].reshape(N, H, W, Cout)
    return jnp.transpose(out, (0, 3, 1, 2))                       # NCHW


def basic_block_reference(x, w1, bn1, w2, bn2, eps=1e-5):
    """Pure-JAX reference (lax.conv) matching the PyTorch forward."""
    def conv(a, w):
        return lax.conv_general_dilated(
            a, w, window_strides=(1, 1), padding=((1, 1), (1, 1)),
            dimension_numbers=("NCHW", "OIHW", "NCHW"))

    def bn(a, p):
        g, b, m, v = p
        s = g / jnp.sqrt(v + eps)
        return a * s[None, :, None, None] + (b - m * s)[None, :, None, None]

    out = jnp.maximum(bn(conv(x, w1), bn1), 0.0)
    out = bn(conv(out, w2), bn2) + x
    return jnp.maximum(out, 0.0)


if __name__ == "__main__":
    # inplanes = planes = 8, W*C = 128 lanes; N=6 with block_images=4 exercises
    # both the multi-image-per-step batching and the batch-remainder padding.
    N, C, H, W = 6, 8, 16, 16

    key = jax.random.PRNGKey(0)
    kx, kw1, kw2, kb = jax.random.split(key, 4)
    x = jax.random.normal(kx, (N, C, H, W), jnp.float32)

    w1 = 0.1 * jax.random.normal(kw1, (C, C, 3, 3), jnp.float32)   # OIHW
    w2 = 0.1 * jax.random.normal(kw2, (C, C, 3, 3), jnp.float32)   # OIHW

    kb1, kb2, kb3, kb4 = jax.random.split(kb, 4)
    bn1 = (1.0 + 0.1 * jax.random.normal(kb1, (C,), jnp.float32),     # gamma
           0.05 * jax.random.normal(kb2, (C,), jnp.float32),          # beta
           0.1 * jax.random.normal(kb3, (C,), jnp.float32),           # mean
           0.5 + jnp.abs(jax.random.normal(kb4, (C,), jnp.float32)))  # var
    bn2 = (1.0 - 0.1 * jax.random.normal(kb2, (C,), jnp.float32),
           0.05 * jax.random.normal(kb3, (C,), jnp.float32),
           0.1 * jax.random.normal(kb4, (C,), jnp.float32),
           0.5 + jnp.abs(jax.random.normal(kb1, (C,), jnp.float32)))

    ref = basic_block_reference(x, w1, bn1, w2, bn2)

    # f32 MXU operands: strict check
    out = basic_block_pallas(x, w1, bn1, w2, bn2, block_images=4,
                             compute_dtype=jnp.float32)
    out = jax.block_until_ready(out)
    assert out.shape == ref.shape == (N, C, H, W)
    assert jnp.allclose(out, ref, atol=2e-3, rtol=2e-3), (
        float(jnp.max(jnp.abs(out - ref))))

    # bf16 MXU operands (v6e/v7x fast path), f32 accumulation/epilogue: loose check
    out_bf16 = basic_block_pallas(x, w1, bn1, w2, bn2, block_images=4,
                                  compute_dtype=jnp.bfloat16)
    out_bf16 = jax.block_until_ready(out_bf16)
    assert jnp.allclose(out_bf16, ref, atol=5e-2, rtol=5e-2), (
        float(jnp.max(jnp.abs(out_bf16 - ref))))

    print("KERNEL_OK")
</pallas_src>

<mosaic_0001>
module attributes {stable_mosaic.version = 11 : i64} {
  func.func @basic_block_kernel(%arg0: i32, %arg1: memref<64x128xf32, #tpu.memory_space<vmem>>, %arg2: memref<2x384x128xf32, #tpu.memory_space<vmem>>, %arg3: memref<4x128xf32, #tpu.memory_space<vmem>>, %arg4: memref<64x128xf32, #tpu.memory_space<vmem>>) attributes {dimension_semantics = [#tpu.dimension_semantics<parallel>], iteration_bounds = array<i64: 2>, scalar_prefetch = 0 : i64, scratch_operands = 0 : i64, tpu.core_type = #tpu.core_type<tc>, window_params = [{transform_indices = @transform_0, window_bounds = array<i64: 64, 128>}, {pipeline_mode = #tpu.pipeline_mode<synchronous>, transform_indices = @transform_1, window_bounds = array<i64: 2, 384, 128>}, {pipeline_mode = #tpu.pipeline_mode<synchronous>, transform_indices = @transform_2, window_bounds = array<i64: 4, 128>}, {transform_indices = @transform_3, window_bounds = array<i64: 64, 128>}]} {
    %c0 = arith.constant 0 : index
    %c0_0 = arith.constant 0 : index
    %0 = vector.load %arg1[%c0, %c0_0] : memref<64x128xf32, #tpu.memory_space<vmem>>, vector<64x128xf32>
    %1 = tpu.iota {dimensions = array<i32: 0>} : vector<64x1xi32>
    %c16_i32 = arith.constant 16 : i32
    %c0_i32 = arith.constant 0 : i32
    %2 = arith.cmpi eq, %c16_i32, %c0_i32 : i32
    %c1_i32 = arith.constant 1 : i32
    %3 = arith.select %2, %c1_i32, %c16_i32 : i32
    %4 = vector.broadcast %3 : i32 to vector<64x1xi32>
    %5 = arith.remsi %1, %4 : vector<64x1xi32>
    %c0_i32_1 = arith.constant 0 : i32
    %6 = vector.broadcast %c0_i32_1 : i32 to vector<64x1xi32>
    %7 = arith.cmpi ne, %5, %6 : vector<64x1xi32>
    %c0_i32_2 = arith.constant 0 : i32
    %8 = vector.broadcast %c0_i32_2 : i32 to vector<64x1xi32>
    %9 = arith.cmpi slt, %5, %8 : vector<64x1xi32>
    %c0_i32_3 = arith.constant 0 : i32
    %10 = arith.cmpi slt, %3, %c0_i32_3 : i32
    %11 = vector.broadcast %10 : i1 to vector<64x1xi1>
    %12 = vector.broadcast %11 : vector<64x1xi1> to vector<64x1xi1>
    %13 = arith.xori %9, %12 : vector<64x1xi1>
    %14 = arith.andi %13, %7 : vector<64x1xi1>
    %15 = vector.broadcast %3 : i32 to vector<64x1xi32>
    %16 = arith.addi %5, %15 : vector<64x1xi32>
    %17 = arith.select %14, %16, %5 : vector<64x1xi1>, vector<64x1xi32>
    %c0_i32_4 = arith.constant 0 : i32
    %18 = vector.broadcast %c0_i32_4 : i32 to vector<64x1xi32>
    %19 = arith.cmpi ne, %17, %18 : vector<64x1xi32>
    %c15_i32 = arith.constant 15 : i32
    %20 = vector.broadcast %c15_i32 : i32 to vector<64x1xi32>
    %21 = arith.cmpi ne, %17, %20 : vector<64x1xi32>
    %cst = arith.constant 0.000000e+00 : f32
    %22 = vector.broadcast %cst : f32 to vector<1x128xf32>
    %23 = vector.extract_strided_slice %0 {offsets = [0, 0], sizes = [63, 128], strides = [1, 1]} : vector<64x128xf32> to vector<63x128xf32>
    %24 = tpu.concatenate %22, %23 in 0 : vector<1x128xf32>, vector<63x128xf32> -> vector<64x128xf32>
    %cst_5 = arith.constant 0.000000e+00 : f32
    %25 = vector.shape_cast %19 : vector<64x1xi1> to vector<64x1xi1>
    %26 = vector.broadcast %25 : vector<64x1xi1> to vector<64x128xi1>
    %27 = vector.broadcast %cst_5 : f32 to vector<64x128xf32>
    %28 = arith.select %26, %24, %27 : vector<64x128xi1>, vector<64x128xf32>
    %29 = vector.extract_strided_slice %0 {offsets = [1, 0], sizes = [63, 128], strides = [1, 1]} : vector<64x128xf32> to vector<63x128xf32>
    %30 = tpu.concatenate %29, %22 in 0 : vector<63x128xf32>, vector<1x128xf32> -> vector<64x128xf32>
    %cst_6 = arith.constant 0.000000e+00 : f32
    %31 = vector.shape_cast %21 : vector<64x1xi1> to vector<64x1xi1>
    %32 = vector.broadcast %31 : vector<64x1xi1> to vector<64x128xi1>
    %33 = vector.broadcast %cst_6 : f32 to vector<64x128xf32>
    %34 = arith.select %32, %30, %33 : vector<64x128xi1>, vector<64x128xf32>
    %35 = tpu.concatenate %28, %0, %34 in 1 : vector<64x128xf32>, vector<64x128xf32>, vector<64x128xf32> -> vector<64x384xf32>
    %c0_7 = arith.constant 0 : index
    %c0_8 = arith.constant 0 : index
    %c0_9 = arith.constant 0 : index
    %36 = vector.load %arg2[%c0_7, %c0_8, %c0_9] : memref<2x384x128xf32, #tpu.memory_space<vmem>>, vector<1x384x128xf32>
    %37 = vector.shape_cast %36 : vector<1x384x128xf32> to vector<384x128xf32>
    %cst_10 = arith.constant dense<0.000000e+00> : vector<64x128xf32>
    %38 = tpu.matmul %35, %37, %cst_10 {dimension_numbers = #tpu.dot_dimension_numbers<[1], [0], [0], [1], [0, 0, 1, 1], [], []>} : vector<64x384xf32>, vector<384x128xf32>, vector<64x128xf32> -> vector<64x128xf32>
    %c0_11 = arith.constant 0 : index
    %c0_12 = arith.constant 0 : index
    %39 = vector.load %arg3[%c0_11, %c0_12] : memref<4x128xf32, #tpu.memory_space<vmem>>, vector<1x128xf32>
    %40 = vector.broadcast %39 : vector<1x128xf32> to vector<64x128xf32>
    %41 = arith.mulf %38, %40 : vector<64x128xf32>
    %c1 = arith.constant 1 : index
    %c0_13 = arith.constant 0 : index
    %42 = vector.load %arg3[%c1, %c0_13] : memref<4x128xf32, #tpu.memory_space<vmem>>, vector<1x128xf32>
    %43 = vector.broadcast %42 : vector<1x128xf32> to vector<64x128xf32>
    %44 = arith.addf %41, %43 : vector<64x128xf32>
    %cst_14 = arith.constant 0.000000e+00 : f32
    %45 = vector.broadcast %cst_14 : f32 to vector<64x128xf32>
    %46 = arith.maximumf %44, %45 : vector<64x128xf32>
    %47 = vector.extract_strided_slice %46 {offsets = [0, 0], sizes = [63, 128], strides = [1, 1]} : vector<64x128xf32> to vector<63x128xf32>
    %48 = tpu.concatenate %22, %47 in 0 : vector<1x128xf32>, vector<63x128xf32> -> vector<64x128xf32>
    %cst_15 = arith.constant 0.000000e+00 : f32
    %49 = vector.shape_cast %19 : vector<64x1xi1> to vector<64x1xi1>
    %50 = vector.broadcast %49 : vector<64x1xi1> to vector<64x128xi1>
    %51 = vector.broadcast %cst_15 : f32 to vector<64x128xf32>
    %52 = arith.select %50, %48, %51 : vector<64x128xi1>, vector<64x128xf32>
    %53 = vector.extract_strided_slice %46 {offsets = [1, 0], sizes = [63, 128], strides = [1, 1]} : vector<64x128xf32> to vector<63x128xf32>
    %54 = tpu.concatenate %53, %22 in 0 : vector<63x128xf32>, vector<1x128xf32> -> vector<64x128xf32>
    %cst_16 = arith.constant 0.000000e+00 : f32
    %55 = vector.shape_cast %21 : vector<64x1xi1> to vector<64x1xi1>
    %56 = vector.broadcast %55 : vector<64x1xi1> to vector<64x128xi1>
    %57 = vector.broadcast %cst_16 : f32 to vector<64x128xf32>
    %58 = arith.select %56, %54, %57 : vector<64x128xi1>, vector<64x128xf32>
    %59 = tpu.concatenate %52, %46, %58 in 1 : vector<64x128xf32>, vector<64x128xf32>, vector<64x128xf32> -> vector<64x384xf32>
    %c1_17 = arith.constant 1 : index
    %c0_18 = arith.constant 0 : index
    %c0_19 = arith.constant 0 : index
    %60 = vector.load %arg2[%c1_17, %c0_18, %c0_19] : memref<2x384x128xf32, #tpu.memory_space<vmem>>, vector<1x384x128xf32>
    %61 = vector.shape_cast %60 : vector<1x384x128xf32> to vector<384x128xf32>
    %cst_20 = arith.constant dense<0.000000e+00> : vector<64x128xf32>
    %62 = tpu.matmul %59, %61, %cst_20 {dimension_numbers = #tpu.dot_dimension_numbers<[1], [0], [0], [1], [0, 0, 1, 1], [], []>} : vector<64x384xf32>, vector<384x128xf32>, vector<64x128xf32> -> vector<64x128xf32>
    %c2 = arith.constant 2 : index
    %c0_21 = arith.constant 0 : index
    %63 = vector.load %arg3[%c2, %c0_21] : memref<4x128xf32, #tpu.memory_space<vmem>>, vector<1x128xf32>
    %64 = vector.broadcast %63 : vector<1x128xf32> to vector<64x128xf32>
    %65 = arith.mulf %62, %64 : vector<64x128xf32>
    %c3 = arith.constant 3 : index
    %c0_22 = arith.constant 0 : index
    %66 = vector.load %arg3[%c3, %c0_22] : memref<4x128xf32, #tpu.memory_space<vmem>>, vector<1x128xf32>
    %67 = vector.broadcast %66 : vector<1x128xf32> to vector<64x128xf32>
    %68 = arith.addf %65, %67 : vector<64x128xf32>
    %69 = arith.addf %68, %0 : vector<64x128xf32>
    %cst_23 = arith.constant 0.000000e+00 : f32
    %70 = vector.broadcast %cst_23 : f32 to vector<64x128xf32>
    %71 = arith.maximumf %69, %70 : vector<64x128xf32>
    %c0_24 = arith.constant 0 : index
    %c0_25 = arith.constant 0 : index
    %72 = vector.load %arg4[%c0_24, %c0_25] : memref<64x128xf32, #tpu.memory_space<vmem>>, vector<64x128xf32>
    tpu.vector_store %arg4[%c0_24, %c0_25], %71 {strides = array<i32>} : memref<64x128xf32, #tpu.memory_space<vmem>>, vector<64x128xf32>,
    return
  }
  func.func @transform_0(%arg0: i32) -> (i32, i32) {
    %c0_i32 = arith.constant 0 : i32
    %c0_i32_0 = arith.constant 0 : i32
    return %arg0, %c0_i32 : i32, i32
  }
  func.func @transform_1(%arg0: i32) -> (i32, i32, i32) {
    %c0_i32 = arith.constant 0 : i32
    %c0_i32_0 = arith.constant 0 : i32
    %c0_i32_1 = arith.constant 0 : i32
    %c0_i32_2 = arith.constant 0 : i32
    return %c0_i32, %c0_i32_0, %c0_i32_1 : i32, i32, i32
  }
  func.func @transform_2(%arg0: i32) -> (i32, i32) {
    %c0_i32 = arith.constant 0 : i32
    %c0_i32_0 = arith.constant 0 : i32
    %c0_i32_1 = arith.constant 0 : i32
    return %c0_i32, %c0_i32_0 : i32, i32
  }
  func.func @transform_3(%arg0: i32) -> (i32, i32) {
    %c0_i32 = arith.constant 0 : i32
    %c0_i32_0 = arith.constant 0 : i32
    return %arg0, %c0_i32 : i32, i32
  }
}

</mosaic_0001>

<bundles_post_ra>
// kernel: tile.23
= control target key start
LH: loop header
LB: loop body
LE: loop exit
PB: predicated region body
PF: predicated region fallthrough
CT: control target
= control target key end

     0   :  { %s28_s0 = inlined_call_operand.vmem [shape: f32[8], index: 0, kind: input, shape index: {}]   ;;  %s29_s1 = inlined_call_operand.vmem [shape: f32[16,8], index: 1, kind: output, shape index: {}]  }
   0x1   :  { %v4_v0 = vld [vmem:[%s28_s0] ss:$0 sm:$0xff] }
   0x2   :  { %5 = vst [vmem:[%s29_s1] sm:$0xff] %v4_v0  ;;  %8 = vst [vmem:[%s29_s1 + $0x8] sm:$0xff] %v4_v0 }

// kernel: tile.36
= control target key start
LH: loop header
LB: loop body
LE: loop exit
PB: predicated region body
PF: predicated region fallthrough
CT: control target
= control target key end

     0   :  { %s131_s10 = smov 120   ;;  %s132_s11 = smov 104   ;;  %vm3_vm0 = vcmask 64512   ;;  %vm9_vm1 = vcmask 1048512   ;;  %vm15_vm2 = vcmask 982912   ;;  %vm21_vm3 = vcmask 917312   ;;  %s207_s0 = inlined_call_operand.vmem [shape: f32[16,8], index: 0, kind: input, shape index: {}]   ;;  %s208_s1 = inlined_call_operand.vmem [shape: f32[1,128], index: 1, kind: output, shape index: {}]  }
   0x1   :  { %v101_v0 = vld [vmem:[%s207_s0 + $0xf] sm:$0x1]   ;;  %v103_v1 = vld [vmem:[%s207_s0 + $0xd] sm:$0x1]   ;;  %v102_v2 = vld [vmem:[%s207_s0 + $0xe] sm:$0x1]  }
   0x2   :  { %7 = vrot.lane.b32.xlu0 %v101_v0, %s131_s10  ;;  %19 = vrot.lane.b32.xlu1 %v103_v1, %s132_s11  ;;  %v104_v3 = vld [vmem:[%s207_s0 + $0xc] sm:$0x1]   ;;  %s133_s16 = smov 112   ;;  %s134_s17 = smov 96   ;;  %v105_v4 = vld [vmem:[%s207_s0 + $0xb] sm:$0x1]  }
   0x3   :  { %v106_v5 = vld [vmem:[%s207_s0 + $0xa] sm:$0x1]   ;;  %v2_v6 = vld [vmem:[%s207_s0] sm:$0x1]   ;;  %s135_s24 = smov 88   ;;  %s136_s25 = smov 80  }
   0x4   :  { %4 = vst.msk [vmem:[#allocation0] sm:$0x1] %vm3_vm0, %v2_v6   ;;  %v107_v7 = vld [vmem:[%s207_s0 + $0x9] sm:$0x1]   ;;  %v108_v8 = vld [vmem:[%s207_s0 + $0x8] sm:$0x1]  }
   0x5   :  { %s137_s30 = smov 72   ;;  %s138_s2 = smov 64   ;;  %v109_v9 = vld [vmem:[%s207_s0 + $0x7] sm:$0x1]   ;;  %v110_v10 = vld [vmem:[%s207_s0 + $0x6] sm:$0x1]  }
   0x6   :  { %13 = vrot.lane.b32.xlu0 %v102_v2, %s133_s16  ;;  %25 = vrot.lane.b32.xlu1 %v104_v3, %s134_s17  ;;  %s139_s7 = smov 56   ;;  %s140_s8 = smov 48   ;;  %v111_v11 = vld [vmem:[%s207_s0 + $0x5] sm:$0x1]   ;;  %v112_v12 = vld [vmem:[%s207_s0 + $0x4] sm:$0x1]  }
   0x7   :  { %s141_s13 = smov 40   ;;  %s142_s14 = smov 32   ;;  %v113_v13 = vld [vmem:[%s207_s0 + $0x3] sm:$0x1]   ;;  %v114_v14 = vld [vmem:[%s207_s0 + $0x2] sm:$0x1]  }
   0x8   :  { %s143_s19 = smov 24   ;;  %s144_s20 = smov 16   ;;  %v115_v15 = vld [vmem:[%s207_s0 + $0x1] sm:$0x1]   ;;  %vm27_vm4 = vcmask 851712   ;;  %vm33_vm5 = vcmask 786112  }
   0x9   :  { %s145_s0 = smov 8   ;;  %vm39_vm6 = vcmask 720512   ;;  %vm45_vm7 = vcmask 654912   ;;  %vm51_vm8 = vcmask 589312   ;;  %vm57_vm9 = vcmask 523712  }
   0xa   :  { %31 = vrot.lane.b32.xlu0 %v105_v4, %s135_s24  ;;  %37 = vrot.lane.b32.xlu1 %v106_v5, %s136_s25  ;;  %vm63_vm10 = vcmask 458112   ;;  %vm69_vm11 = vcmask 392512   ;;  %vm75_vm12 = vcmask 326912   ;;  %vm81_vm13 = vcmask 261312  }
   0xb   :  { %vm87_vm14 = vcmask 195712   ;;  %vm93_vm15 = vcmask 130112  }
   0xe   :  { %43 = vrot.lane.b32.xlu0 %v107_v7, %s137_s30  ;;  %49 = vrot.lane.b32.xlu1 %v108_v8, %s138_s2 }
  0x12   :  { %55 = vrot.lane.b32.xlu0 %v109_v9, %s139_s7  ;;  %61 = vrot.lane.b32.xlu1 %v110_v10, %s140_s8 }
  0x16   :  { %67 = vrot.lane.b32.xlu0 %v111_v11, %s141_s13  ;;  %73 = vrot.lane.b32.xlu1 %v112_v12, %s142_s14 }
  0x1a   :  { %79 = vrot.lane.b32.xlu0 %v113_v13, %s143_s19  ;;  %85 = vrot.lane.b32.xlu1 %v114_v14, %s144_s20 }
  0x1e   :  { %91 = vrot.lane.b32.xlu0 %v115_v15, %s145_s0 }
  0x74   :  { %v8_v16 = vpop.permute.xlu0 %7   ;;  %v20_v17 = vpop.permute.xlu1 %19  }
  0x75   :  { %10 = vst.msk [vmem:[#allocation0] sm:$0x1] %vm9_vm1, %v8_v16  }
  0x78   :  { %v14_v18 = vpop.permute.xlu0 %13   ;;  %v26_v19 = vpop.permute.xlu1 %25  }
  0x79   :  { %16 = vst.msk [vmem:[#allocation0] sm:$0x1] %vm15_vm2, %v14_v18  }
  0x7a   :  { %22 = vst.msk [vmem:[#allocation0] sm:$0x1] %vm21_vm3, %v20_v17  }
  0x7b   :  { %28 = vst.msk [vmem:[#allocation0] sm:$0x1] %vm27_vm4, %v26_v19  }
  0x7c   :  { %v32_v20 = vpop.permute.xlu0 %31   ;;  %v38_v21 = vpop.permute.xlu1 %37  }
  0x7d   :  { %34 = vst.msk [vmem:[#allocation0] sm:$0x1] %vm33_vm5, %v32_v20  }
  0x7e   :  { %40 = vst.msk [vmem:[#allocation0] sm:$0x1] %vm39_vm6, %v38_v21  }
  0x80   :  { %v44_v22 = vpop.permute.xlu0 %43   ;;  %v50_v23 = vpop.permute.xlu1 %49  }
  0x81   :  { %46 = vst.msk [vmem:[#allocation0] sm:$0x1] %vm45_vm7, %v44_v22  }
  0x82   :  { %52 = vst.msk [vmem:[#allocation0] sm:$0x1] %vm51_vm8, %v50_v23  }
  0x84   :  { %v56_v24 = vpop.permute.xlu0 %55   ;;  %v62_v25 = vpop.permute.xlu1 %61  }
  0x85   :  { %58 = vst.msk [vmem:[#allocation0] sm:$0x1] %vm57_vm9, %v56_v24  }
  0x86   :  { %64 = vst.msk [vmem:[#allocation0] sm:$0x1] %vm63_vm10, %v62_v25  }
  0x88   :  { %v68_v26 = vpop.permute.xlu0 %67   ;;  %v74_v27 = vpop.permute.xlu1 %73  }
  0x89   :  { %70 = vst.msk [vmem:[#allocation0] sm:$0x1] %vm69_vm11, %v68_v26  }
  0x8a   :  { %76 = vst.msk [vmem:[#allocation0] sm:$0x1] %vm75_vm12, %v74_v27  }
  0x8c   :  { %v80_v28 = vpop.permute.xlu0 %79   ;;  %v86_v29 = vpop.permute.xlu1 %85  }
  0x8d   :  { %82 = vst.msk [vmem:[#allocation0] sm:$0x1] %vm81_vm13, %v80_v28  }
  0x8e   :  { %88 = vst.msk [vmem:[#allocation0] sm:$0x1] %vm87_vm14, %v86_v29  }
  0x90   :  { %v92_v30 = vpop.permute.xlu0 %91  }
  0x91   :  { %94 = vst.msk [vmem:[#allocation0] sm:$0x1] %vm93_vm15, %v92_v30  }
  0x98   :  { %v98_v31 = vld [vmem:[#allocation0] sm:$0x1] }
  0x99   :  { %100 = vst [vmem:[%s208_s1] sm:$0x1] %v98_v31 }

// kernel: basic_block_pallas.1
= control target key start
LH: loop header
LB: loop body
LE: loop exit
PB: predicated region body
PF: predicated region fallthrough
CT: control target
= control target key end

     0   :  { %s1629_s12 = smov 0   ;;  %s2180_s0 = inlined_call_operand.vmem [shape: f32[128,128], index: 0, kind: input, shape index: {}]   ;;  %s2181_s1 = inlined_call_operand.vmem [shape: f32[2,384,128], index: 1, kind: input, shape index: {}]   ;;  %s2182_s2 = inlined_call_operand.vmem [shape: f32[4,128], index: 2, kind: input, shape index: {}]   ;;  %s2183_s3 = inlined_call_operand.vmem [shape: f32[128,128], index: 3, kind: output, shape index: {}]  }
   0x1 LB: > { %s1138_s13 = sadd.s32 4294967295, %s1607_s12   ;;  %p1142_p0 = scmp.ge.s32.totalorder %s1607_s12, 1  ;;  %s1607_s12 = sphi %s1629_s12, %s13_s12  }
   0x2   : > { %p138_p1 = scmp.lt.s32.totalorder %s1607_s12, 3 }
   0x4   : > { %p139_p2 = pnand %p1142_p0, %p138_p1 }
   0x5   : > { %v425_v0 = vld [vmem:[%s2181_s1 + $0x80] sm:$0xff] (!%p139_p2)  ;;  %v426_v1 = vld [vmem:[%s2181_s1 + $0x88] sm:$0xff] (!%p139_p2)  ;;  %s1646_s20 = sshll.u32 (!%p139_p2), %s1138_s13, 3  ;;  %v427_v9 = vld [vmem:[%s2181_s1 + $0x90] sm:$0xff] (!%p139_p2)  ;;  %vm360_vm0 = vcmask (!%p139_p2), 1046528   ;;  %v182_v54 = vlaneseq (!%p139_p2)  ;;  %vm311_vm1 = vcmask (!%p139_p2), 1040384  }
   0x6   : > { %142 = sbr.rel (%p139_p2) target bundleno = 521 (0x209), region = 32  ;;  %v409_v2 = vld [vmem:[%s2181_s1] sm:$0xff] (!%p139_p2)  ;;  %v1465_v3 = vpack.c.bf16 (!%p139_p2), %v426_v1, %v425_v0  ;;  %v410_v4 = vld [vmem:[%s2181_s1 + $0x8] sm:$0xff] (!%p139_p2)  ;;  %v428_v10 = vld [vmem:[%s2181_s1 + $0x98] sm:$0xff] (!%p139_p2)  ;;  %p163_p3 = scmp.lt.s32.totalorder (!%p139_p2), %s1646_s20, 15 }
   0x7   : > { %v441_v5 = vld [vmem:[%s2181_s1 + $0x100] sm:$0xff] (!%p139_p2)  ;;  %v442_v6 = vld [vmem:[%s2181_s1 + $0x108] sm:$0xff] (!%p139_p2)  ;;  %v1467_v7 = vpack.c.bf16 (!%p139_p2), %v410_v4, %v409_v2  ;;  %v411_v11 = vld [vmem:[%s2181_s1 + $0x10] sm:$0xff] (!%p139_p2)  ;;  %v1469_v12 = vpack.c.bf16 (!%p139_p2), %v428_v10, %v427_v9 }
   0x8   : > { %v1497_v8 = vpack.c.bf16 (!%p139_p2), %v442_v6, %v441_v5  ;;  %1466 = vmatprep.subr.bf16.mxu0 (!%p139_p2), %v1465_v3  ;;  %v412_v13 = vld [vmem:[%s2181_s1 + $0x18] sm:$0xff] (!%p139_p2)  ;;  %v443_v14 = vld [vmem:[%s2181_s1 + $0x110] sm:$0xff] (!%p139_p2)  ;;  %v429_v18 = vld [vmem:[%s2181_s1 + $0xa0] sm:$0xff] (!%p139_p2)  ;;  %v1791_v3 = vshrl.u32 (!%p139_p2), %v182_v54, 7 }
   0x9   : > { %v444_v15 = vld [vmem:[%s2181_s1 + $0x118] sm:$0xff] (!%p139_p2)  ;;  %1468 = vmatpush3.bf16.msra.mxu0 (!%p139_p2), %v1467_v7  ;;  %v1471_v16 = vpack.c.bf16 (!%p139_p2), %v412_v13, %v411_v11  ;;  %v430_v19 = vld [vmem:[%s2181_s1 + $0xa8] sm:$0xff] (!%p139_p2)  ;;  %v413_v20 = vld [vmem:[%s2181_s1 + $0x20] sm:$0xff] (!%p139_p2) }
   0xa   : > { %1498 = vmatprep.subr.bf16.mxu1 (!%p139_p2), %v1497_v8  ;;  %v1501_v17 = vpack.c.bf16 (!%p139_p2), %v444_v15, %v443_v14  ;;  %1470 = vmatprep.subr.bf16.mxu0 (!%p139_p2), %v1469_v12  ;;  %v1473_v21 = vpack.c.bf16 (!%p139_p2), %v430_v19, %v429_v18  ;;  %v414_v22 = vld [vmem:[%s2181_s1 + $0x28] sm:$0xff] (!%p139_p2)  ;;  %v445_v23 = vld [vmem:[%s2181_s1 + $0x120] sm:$0xff] (!%p139_p2)  ;;  %v431_v26 = vld [vmem:[%s2181_s1 + $0xb0] sm:$0xff] (!%p139_p2)  ;;  %v184_v13 = vadd.s32 (!%p139_p2), 8, %v1791_v3  ;;  %v195_v18 = vand.u32 (!%p139_p2), 15, %v1791_v3 }
   0xb   : > { %1500 = vmatpush3.bf16.msra.mxu1 (!%p139_p2), %v1497_v8  ;;  %v446_v24 = vld [vmem:[%s2181_s1 + $0x128] sm:$0xff] (!%p139_p2)  ;;  %v432_v27 = vld [vmem:[%s2181_s1 + $0xb8] sm:$0xff] (!%p139_p2)  ;;  %v447_v28 = vld [vmem:[%s2181_s1 + $0x130] sm:$0xff] (!%p139_p2)  ;;  %v1475_v30 = vpack.c.bf16 (!%p139_p2), %v414_v22, %v413_v20 }
   0xc   : > { %1502 = vmatprep.subr.bf16.mxu1 (!%p139_p2), %v1501_v17  ;;  %v1505_v25 = vpack.c.bf16 (!%p139_p2), %v446_v24, %v445_v23  ;;  %v448_v29 = vld [vmem:[%s2181_s1 + $0x138] sm:$0xff] (!%p139_p2)  ;;  %v1477_v31 = vpack.c.bf16 (!%p139_p2), %v432_v27, %v431_v26  ;;  %v415_v32 = vld [vmem:[%s2181_s1 + $0x30] sm:$0xff] (!%p139_p2)  ;;  %v433_v35 = vld [vmem:[%s2181_s1 + $0xc0] sm:$0xff] (!%p139_p2)  ;;  %v186_v24 = vadd.s32 (!%p139_p2), 24, %v1791_v3  ;;  %vm1844_vm2 = vcmp.ne.s32.totalorder (!%p139_p2), %v195_v18, 0 }
   0xd   : > { %s2201_s20 = smov (!%p163_p3, %s1646_s20), 15  ;;  %1472 = vmatpush3.bf16.msra.mxu0 %v1471_v16  ;;  %v416_v33 = vld [vmem:[%s2181_s1 + $0x38] sm:$0xff]  ;;  %v1509_v34 = vpack.c.bf16 %v448_v29, %v447_v28  ;;  %v434_v36 = vld [vmem:[%s2181_s1 + $0xc8] sm:$0xff]  ;;  %v449_v37 = vld [vmem:[%s2181_s1 + $0x140] sm:$0xff] }
   0xe   : > { %1474 = vmatprep.subr.bf16.mxu0 %v1473_v21  ;;  %s1144_s16 = sshll.u32 %s2201_s20, 3  ;;  %v450_v38 = vld [vmem:[%s2181_s1 + $0x148] sm:$0xff]  ;;  %v1479_v39 = vpack.c.bf16 %v416_v33, %v415_v32  ;;  %v1481_v40 = vpack.c.bf16 %v434_v36, %v433_v35  ;;  %v417_v41 = vld [vmem:[%s2181_s1 + $0x40] sm:$0xff]  ;;  %v435_v44 = vld [vmem:[%s2181_s1 + $0xd0] sm:$0xff] }
   0xf   : > { %1504 = vmatpush3.bf16.msra.mxu1 %v1501_v17  ;;  %v418_v42 = vld [vmem:[%s2181_s1 + $0x48] sm:$0xff]  ;;  %s1741_s28 = scalar_lea.vmem %s2180_s0, %s1144_s16  ;;  %v1513_v43 = vpack.c.bf16 %v450_v38, %v449_v37  ;;  %v436_v45 = vld [vmem:[%s2181_s1 + $0xd8] sm:$0xff]  ;;  %v451_v46 = vld [vmem:[%s2181_s1 + $0x150] sm:$0xff]  ;;  %s2148_s29 = scalar_lea.vmem %s2183_s3, %s1144_s16 }
  0x10   : > { %1506 = vmatprep.subr.bf16.mxu1 %v1505_v25  ;;  %v452_v47 = vld [vmem:[%s2181_s1 + $0x158] sm:$0xff]  ;;  %v1483_v48 = vpack.c.bf16 %v418_v42, %v417_v41  ;;  %v1756_v49 = vld [vmem:[%s1741_s28] sm:$0xff]  ;;  %v1759_v50 = vld [vmem:[%s1741_s28 + $0x8] sm:$0xff]  ;;  %v1485_v51 = vpack.c.bf16 %v436_v45, %v435_v44  ;;  %v188_v41 = vadd.s32 40, %v1791_v3 }
  0x11   : > { %1476 = vmatpush3.bf16.msra.mxu0 %v1475_v30  ;;  %v419_v52 = vld [vmem:[%s2181_s1 + $0x50] sm:$0xff]  ;;  %v420_v53 = vld [vmem:[%s2181_s1 + $0x58] sm:$0xff]  ;;  %v361_v55 = vrot.slane %v1756_v49, 1  ;;  %v362_v56 = vrot.slane %v1759_v50, 1  ;;  %v1517_v57 = vpack.c.bf16 %v452_v47, %v451_v46  ;;  %v437_v58 = vld [vmem:[%s2181_s1 + $0xe0] sm:$0xff]  ;;  %521 = vmatprep.mubr.f32.mxu0 %v1756_v49  ;;  %v312_v23 = vrot.slane %v1756_v49, 7 }
  0x12   : > { %1478 = vmatprep.subr.bf16.mxu0 %v1477_v31  ;;  %v438_v59 = vld [vmem:[%s2181_s1 + $0xe8] sm:$0xff]  ;;  %v453_v60 = vld [vmem:[%s2181_s1 + $0x160] sm:$0xff]  ;;  %v1487_v63 = vpack.c.bf16 %v420_v53, %v419_v52  ;;  %v439_v5 = vld [vmem:[%s2181_s1 + $0xf0] sm:$0xff] }
  0x13   : > { %1508 = vmatpush3.bf16.msra.mxu1 %v1505_v25  ;;  %v454_v61 = vld [vmem:[%s2181_s1 + $0x168] sm:$0xff]  ;;  %v363_v62 = vsel %vm360_vm0, %v361_v55, %v362_v56  ;;  %v1489_v0 = vpack.c.bf16 %v438_v59, %v437_v58  ;;  %v421_v1 = vld [vmem:[%s2181_s1 + $0x60] sm:$0xff]  ;;  %v440_v6 = vld [vmem:[%s2181_s1 + $0xf8] sm:$0xff]  ;;  %v202_v25 = vand.u32 15, %v184_v13  ;;  %v335_v38 = vsel %vm311_vm1, 0.0, %v312_v23 }
  0x14   : > { %1510 = vmatprep.subr.bf16.mxu1 %v1509_v34  ;;  %1409 = vmatprep.mubr.f32.mxu1 %v363_v62  ;;  %v422_v2 = vld [vmem:[%s2181_s1 + $0x68] sm:$0xff]  ;;  %v1521_v4 = vpack.c.bf16 %v454_v61, %v453_v60  ;;  %v455_v7 = vld [vmem:[%s2181_s1 + $0x170] sm:$0xff]  ;;  %v456_v8 = vld [vmem:[%s2181_s1 + $0x178] sm:$0xff]  ;;  %v1493_v10 = vpack.c.bf16 %v440_v6, %v439_v5  ;;  %v190_v6 = vadd.s32 56, %v1791_v3 }
  0x15   : > { %1480 = vmatpush3.bf16.msra.mxu0 %v1479_v39  ;;  %v1491_v9 = vpack.c.bf16 %v422_v2, %v421_v1  ;;  %v423_v11 = vld [vmem:[%s2181_s1 + $0x70] sm:$0xff]  ;;  %v424_v12 = vld [vmem:[%s2181_s1 + $0x78] sm:$0xff]  ;;  %v1525_v14 = vpack.c.bf16 %v456_v8, %v455_v7  ;;  %v1173_v16 = vld [vmem:[%s2181_s1 + $0x200] sm:$0xff]  ;;  %v313_v39 = vrot.slane %v1759_v50, 7  ;;  %vm1867_vm3 = vcmp.ne.s32.totalorder %v202_v25, 15 }
  0x16   : > { %1482 = vmatprep.subr.bf16.mxu0 %v1481_v40  ;;  %v1813_v15 = vld [vmem:[%s1741_s28 + $0x10] sm:$0xff]  ;;  %v1174_v17 = vld [vmem:[%s2181_s1 + $0x208] sm:$0xff]  ;;  %v1823_v19 = vld [vmem:[%s1741_s28 + $0x18] sm:$0xff]  ;;  %v1495_v22 = vpack.c.bf16 %v424_v12, %v423_v11  ;;  %v216_v40 = vand.u32 15, %v186_v24  ;;  %v244_v24 = vand.u32 15, %v190_v6 }
  0x17   : > { %1512 = vmatpush3.bf16.msra.mxu1 %v1509_v34  ;;  %v1189_v20 = vld [vmem:[%s2181_s1 + $0x280] sm:$0xff]  ;;  %v1190_v21 = vld [vmem:[%s2181_s1 + $0x288] sm:$0xff]  ;;  %v364_v26 = vrot.slane %v1813_v15, 1  ;;  %v1529_v27 = vpack.c.bf16 %v1174_v17, %v1173_v16  ;;  %v366_v28 = vrot.slane %v1823_v19, 1  ;;  %v185_v34 = vadd.s32 16, %v1791_v3  ;;  %v1175_v36 = vld [vmem:[%s2181_s1 + $0x210] sm:$0xff] }
  0x18   : > { %1514 = vmatprep.subr.bf16.mxu1 %v1513_v43  ;;  %v1836_v29 = vld [vmem:[%s1741_s28 + $0x20] sm:$0xff]  ;;  %v1158_v31 = vld [vmem:[%s2181_s1 + $0x188] sm:$0xff]  ;;  %v1561_v32 = vpack.c.bf16 %v1190_v21, %v1189_v20  ;;  %v1176_v37 = vld [vmem:[%s2181_s1 + $0x218] sm:$0xff]  ;;  %v314_v61 = vsel %vm311_vm1, %v312_v23, %v313_v39  ;;  %v315_v62 = vrot.slane %v1813_v15, 7  ;;  %vm1902_vm4 = vcmp.ne.s32.totalorder %v216_v40, 15 }
  0x19   : > { %1484 = vmatpush3.bf16.msra.mxu0 %v1483_v48  ;;  %v1157_v30 = vld [vmem:[%s2181_s1 + $0x180] sm:$0xff]  ;;  %v1850_v35 = vld [vmem:[%s1741_s28 + $0x28] sm:$0xff]  ;;  %v1191_v42 = vld [vmem:[%s2181_s1 + $0x290] sm:$0xff]  ;;  %v365_v45 = vsel %vm360_vm0, %v362_v56, %v364_v26  ;;  %v368_v46 = vrot.slane %v1836_v29, 1  ;;  %v367_v48 = vsel %vm360_vm0, %v364_v26, %v366_v28  ;;  %v1533_v53 = vpack.c.bf16 %v1176_v37, %v1175_v36 }
  0x1a   : > { %1486 = vmatprep.subr.bf16.mxu0 %v1485_v51  ;;  %v1531_v47 = vpack.c.bf16 %v1158_v31, %v1157_v30  ;;  %v370_v51 = vrot.slane %v1850_v35, 1  ;;  %v1878_v52 = vld [vmem:[%s1741_s28 + $0x30] sm:$0xff]  ;;  %v1160_v55 = vld [vmem:[%s2181_s1 + $0x198] sm:$0xff]  ;;  %v209_v56 = vand.u32 15, %v185_v34  ;;  %v1177_v58 = vld [vmem:[%s2181_s1 + $0x220] sm:$0xff]  ;;  %v316_v18 = vsel %vm311_vm1, %v313_v39, %v315_v62 }
  0x1b   : > { %1516 = vmatpush3.bf16.msra.mxu1 %v1513_v43  ;;  %v1192_v43 = vld [vmem:[%s2181_s1 + $0x298] sm:$0xff]  ;;  %v1159_v54 = vld [vmem:[%s2181_s1 + $0x190] sm:$0xff]  ;;  %v1178_v59 = vld [vmem:[%s2181_s1 + $0x228] sm:$0xff]  ;;  %v372_v5 = vrot.slane %v1878_v52, 1  ;;  %v317_v20 = vrot.slane %v1823_v19, 7  ;;  %v187_v21 = vadd.s32 32, %v1791_v3 }
  0x1c   : > { %1518 = vmatprep.subr.bf16.mxu1 %v1517_v57  ;;  %v1565_v60 = vpack.c.bf16 %v1192_v43, %v1191_v42  ;;  %v1193_v1 = vld [vmem:[%s2181_s1 + $0x2a0] sm:$0xff]  ;;  %v1194_v2 = vld [vmem:[%s2181_s1 + $0x2a8] sm:$0xff]  ;;  %v1535_v7 = vpack.c.bf16 %v1160_v55, %v1159_v54  ;;  %v371_v8 = vsel %vm360_vm0, %v368_v46, %v370_v51  ;;  %v1179_v13 = vld [vmem:[%s2181_s1 + $0x230] sm:$0xff]  ;;  %vm1930_vm5 = vcmp.ne.s32.totalorder %v209_v56, 0 }
  0x1d   : > { %1488 = vmatpush3.bf16.msra.mxu0 %v1487_v63  ;;  %v1161_v11 = vld [vmem:[%s2181_s1 + $0x1a0] sm:$0xff]  ;;  %v1162_v12 = vld [vmem:[%s2181_s1 + $0x1a8] sm:$0xff]  ;;  %v1569_v16 = vpack.c.bf16 %v1194_v2, %v1193_v1  ;;  %v373_v23 = vsel %vm360_vm0, %v370_v51, %v372_v5  ;;  %v1164_v30 = vld [vmem:[%s2181_s1 + $0x1b8] sm:$0xff]  ;;  %v318_v34 = vsel %vm311_vm1, %v315_v62, %v317_v20  ;;  %v223_v36 = vand.u32 15, %v187_v21 }
  0x1e   : > { %1490 = vmatprep.subr.bf16.mxu0 %v1489_v0  ;;  %v230_v0 = vand.u32 15, %v188_v41  ;;  %v1539_v25 = vpack.c.bf16 %v1162_v12, %v1161_v11  ;;  %v1181_v31 = vld [vmem:[%s2181_s1 + $0x240] sm:$0xff]  ;;  %v319_v37 = vrot.slane %v1836_v29, 7  ;;  %vm1964_vm7 = vcmp.ne.s32.totalorder %v244_v24, 15  ;;  %v1166_v43 = vld [vmem:[%s2181_s1 + $0x1c8] sm:$0xff]  ;;  %v1195_v62 = vld [vmem:[%s2181_s1 + $0x2b0] sm:$0xff] }
  0x1f   : > { %1520 = vmatpush3.bf16.msra.mxu1 %v1517_v57  ;;  %v1889_v57 = vld [vmem:[%s1741_s28 + $0x38] sm:$0xff]  ;;  %v1165_v42 = vld [vmem:[%s2181_s1 + $0x1c0] sm:$0xff]  ;;  %vm1976_vm8 = vcmp.ne.s32.totalorder %v223_v36, 0  ;;  %v323_v55 = vrot.slane %v1878_v52, 7  ;;  %v1167_v1 = vld [vmem:[%s2181_s1 + $0x1d0] sm:$0xff] }
  0x20   : > { %1522 = vmatprep.subr.bf16.mxu1 %v1521_v4  ;;  %vm1939_vm6 = vcmp.ne.s32.totalorder %v230_v0, 15  ;;  %v1547_v51 = vpack.c.bf16 %v1166_v43, %v1165_v42  ;;  %v1168_v2 = vld [vmem:[%s2181_s1 + $0x1d8] sm:$0xff]  ;;  %v1170_v11 = vld [vmem:[%s2181_s1 + $0x1e8] sm:$0xff]  ;;  %v1197_v12 = vld [vmem:[%s2181_s1 + $0x2c0] sm:$0xff] }
  0x21   : > { %1492 = vmatpush3.bf16.msra.mxu0 %v1491_v9  ;;  %v374_v9 = vrot.slane %v1889_v57, 1  ;;  %v1199_v21 = vld [vmem:[%s2181_s1 + $0x2d0] sm:$0xff]  ;;  %v1204_v36 = vld [vmem:[%s2181_s1 + $0x2f8] sm:$0xff] }
  0x22   : > { %1494 = vmatprep.subr.bf16.mxu0 %v1493_v10  ;;  %v1537_v10 = vpack.c.bf16 %v1178_v59, %v1177_v58  ;;  %v325_v58 = vrot.slane %v1889_v57, 7  ;;  %v1171_v24 = vld [vmem:[%s2181_s1 + $0x1f0] sm:$0xff] }
  0x23   : > { %1524 = vmatpush3.bf16.msra.mxu1 %v1521_v4  ;;  %v369_v4 = vsel %vm360_vm0, %v366_v28, %v368_v46  ;;  %v375_v26 = vsel %vm360_vm0, %v372_v5, %v374_v9  ;;  %v1163_v28 = vld [vmem:[%s2181_s1 + $0x1b0] sm:$0xff]  ;;  %v384_v39 = vsel %vm360_vm0, %v374_v9, 0.0  ;;  %v320_v46 = vsel %vm311_vm1, %v317_v20, %v319_v37  ;;  %v1188_v20 = vld [vmem:[%s2181_s1 + $0x278] sm:$0xff] }
  0x24   : > { %1526 = vmatprep.subr.bf16.mxu1 %v1525_v14  ;;  %v1543_v40 = vpack.c.bf16 %v1164_v30, %v1163_v28  ;;  %v326_v59 = vsel %vm311_vm1, %v323_v55, %v325_v58  ;;  %v1551_v5 = vpack.c.bf16 %v1168_v2, %v1167_v1  ;;  %v1201_v30 = vld [vmem:[%s2181_s1 + $0x2e0] sm:$0xff] }
  0x25   : > { %1496 = vmatpush3.bf16.msra.mxu0 %v1495_v22 }
  0x26   : > { %1530 = vmatprep.subr.bf16.mxu0 %v1529_v27 }
  0x27   : > { %1528 = vmatpush3.bf16.msra.mxu1 %v1525_v14  ;;  %v1180_v14 = vld [vmem:[%s2181_s1 + $0x238] sm:$0xff] }
  0x28   : > { %1562 = vmatprep.subr.bf16.mxu1 %v1561_v32  ;;  %1147 = vmatmul.mubr.msk.f32.vlgmr.msra.gmra.mrb[0].mxu0 %vm1844_vm2, %v335_v38  ;;  %v1541_v27 = vpack.c.bf16 %v1180_v14, %v1179_v13  ;;  %v1198_v14 = vld [vmem:[%s2181_s1 + $0x2c8] sm:$0xff]  ;;  %v2136_v38 = vld [vmem:[%s2182_s2 + $0x3] ss:$0 sm:$0xff] }
  0x29   : > { %526 = vmatprep.mubr.f32.mxu0 %v1759_v50  ;;  %1532 = vmatpush3.bf16.msra.mxu0 %v1531_v47  ;;  %v321_v47 = vrot.slane %v1850_v35, 7 }
  0x2a   : > { %1410 = vmatmul.mubr.msk.f32.vlgmr.msra.gmra.mrb[0].mxu1 %vm1867_vm3, %v365_v45  ;;  %1534 = vmatprep.subr.bf16.mxu0 %v1533_v53 }
  0x2b   : > { %1412 = vmatprep.mubr.f32.mxu1 %v367_v48  ;;  %1564 = vmatpush3.bf16.msra.mxu1 %v1561_v32  ;;  %v1182_v32 = vld [vmem:[%s2181_s1 + $0x248] sm:$0xff]  ;;  %v189_v48 = vadd.s32 48, %v1791_v3  ;;  %v322_v53 = vsel %vm311_vm1, %v319_v37, %v321_v47  ;;  %v324_v56 = vsel %vm311_vm1, %v321_v47, %v323_v55 }
  0x2c   : > { %527 = vmatmul.mubr.f32.gmra.mrb[2].mxu0 %v314_v61  ;;  %1566 = vmatprep.subr.bf16.mxu1 %v1565_v60  ;;  %v1545_v41 = vpack.c.bf16 %v1182_v32, %v1181_v31  ;;  %v1184_v61 = vld [vmem:[%s2181_s1 + $0x258] sm:$0xff]  ;;  %v1202_v31 = vld [vmem:[%s2181_s1 + $0x2e8] sm:$0xff] }
  0x2d   : > { %531 = vmatprep.mubr.f32.mxu0 %v1813_v15  ;;  %1536 = vmatpush3.bf16.msra.mxu0 %v1535_v7  ;;  %v237_v54 = vand.u32 15, %v189_v48  ;;  %v1185_v7 = vld [vmem:[%s2181_s1 + $0x260] sm:$0xff]  ;;  %v1585_v32 = vpack.c.bf16 %v1202_v31, %v1201_v30 }
  0x2e   : > { %1413 = vmatmul.mubr.msk.f32.gmra.mrb[2].mxu1 %vm1902_vm4, %v369_v4  ;;  %1538 = vmatprep.subr.bf16.mxu0 %v1537_v10  ;;  %v1196_v4 = vld [vmem:[%s2181_s1 + $0x2b8] sm:$0xff]  ;;  %v1169_v10 = vld [vmem:[%s2181_s1 + $0x1e0] sm:$0xff] }
  0x2f   : > { %1415 = vmatprep.mubr.f32.mxu1 %v371_v8  ;;  %1568 = vmatpush3.bf16.msra.mxu1 %v1565_v60  ;;  %vm1991_vm9 = vcmp.ne.s32.totalorder %v237_v54, 0  ;;  %v1183_v60 = vld [vmem:[%s2181_s1 + $0x250] sm:$0xff]  ;;  %v1573_v6 = vpack.c.bf16 %v1196_v4, %v1195_v62  ;;  %v1186_v8 = vld [vmem:[%s2181_s1 + $0x268] sm:$0xff]  ;;  %v1555_v13 = vpack.c.bf16 %v1170_v11, %v1169_v10  ;;  %v2075_v54 = vld [vmem:[%s2182_s2 + $0x1] ss:$0 sm:$0xff] }
  0x30   : > { %1148 = vmatmul.mubr.msk.f32.gmra.mrb[4].mxu0 %vm1930_vm5, %v316_v18  ;;  %1570 = vmatprep.subr.bf16.mxu1 %v1569_v16  ;;  %v1549_v0 = vpack.c.bf16 %v1184_v61, %v1183_v60  ;;  %v1553_v9 = vpack.c.bf16 %v1186_v8, %v1185_v7  ;;  %v1187_v18 = vld [vmem:[%s2181_s1 + $0x270] sm:$0xff] }
  0x31   : > { %536 = vmatprep.mubr.f32.mxu0 %v1823_v19  ;;  %1540 = vmatpush3.bf16.msra.mxu0 %v1539_v25  ;;  %v1172_v25 = vld [vmem:[%s2181_s1 + $0x1f8] sm:$0xff] }
  0x32   : > { %1416 = vmatmul.mubr.msk.f32.gmra.mrb[4].mxu1 %vm1939_vm6, %v373_v23  ;;  %1542 = vmatprep.subr.bf16.mxu0 %v1541_v27  ;;  %v1557_v23 = vpack.c.bf16 %v1188_v20, %v1187_v18  ;;  %v1559_v27 = vpack.c.bf16 %v1172_v25, %v1171_v24 }
  0x33   : > { %1418 = vmatprep.mubr.f32.mxu1 %v375_v26  ;;  %1572 = vmatpush3.bf16.msra.mxu1 %v1569_v16  ;;  %v1577_v16 = vpack.c.bf16 %v1198_v14, %v1197_v12  ;;  %v1200_v26 = vld [vmem:[%s2181_s1 + $0x2d8] sm:$0xff] }
  0x34   : > { %537 = vmatmul.mubr.f32.gmra.mrb[6].mxu0 %v318_v34  ;;  %1574 = vmatprep.subr.bf16.mxu1 %v1573_v6  ;;  %v1581_v28 = vpack.c.bf16 %v1200_v26, %v1199_v21  ;;  %v1203_v34 = vld [vmem:[%s2181_s1 + $0x2f0] sm:$0xff] }
  0x35   : > { %541 = vmatprep.mubr.f32.mxu0 %v1836_v29  ;;  %1544 = vmatpush3.bf16.msra.mxu0 %v1543_v40  ;;  %v1589_v37 = vpack.c.bf16 %v1204_v36, %v1203_v34 }
  0x36   : > { %1419 = vmatmul.mubr.msk.f32.gmra.mrb[6].mxu1 %vm1964_vm7, %v384_v39  ;;  %1546 = vmatprep.subr.bf16.mxu0 %v1545_v41 }
  0x37   : > { %1576 = vmatpush3.bf16.msra.mxu1 %v1573_v6 }
  0x38   : > { %1149 = vmatmul.mubr.msk.f32.gmra.mrb[8].mxu0 %vm1976_vm8, %v320_v46  ;;  %1578 = vmatprep.subr.bf16.mxu1 %v1577_v16  ;;  %v2070_v46 = vld [vmem:[%s2182_s2] ss:$0 sm:$0xff] }
  0x39   : > { %546 = vmatprep.mubr.f32.mxu0 %v1850_v35  ;;  %1548 = vmatpush3.bf16.msra.mxu0 %v1547_v51 }
  0x3a   : > { %1550 = vmatprep.subr.bf16.mxu0 %v1549_v0 }
  0x3b   : > { %1580 = vmatpush3.bf16.msra.mxu1 %v1577_v16 }
  0x3c   : > { %547 = vmatmul.mubr.f32.gmra.mrb[10].mxu0 %v322_v53  ;;  %1582 = vmatprep.subr.bf16.mxu1 %v1581_v28 }
  0x3d   : > { %551 = vmatprep.mubr.f32.mxu0 %v1878_v52  ;;  %1552 = vmatpush3.bf16.msra.mxu0 %v1551_v5 }
  0x3e   : > { %1554 = vmatprep.subr.bf16.mxu0 %v1553_v9 }
  0x3f   : > { %1584 = vmatpush3.bf16.msra.mxu1 %v1581_v28 }
  0x40   : > { %1150 = vmatmul.mubr.msk.f32.gmra.mrb[12].mxu0 %vm1991_vm9, %v324_v56  ;;  %1586 = vmatprep.subr.bf16.mxu1 %v1585_v32 }
  0x41   : > { %556 = vmatprep.mubr.f32.mxu0 %v1889_v57  ;;  %1556 = vmatpush3.bf16.msra.mxu0 %v1555_v13 }
  0x42   : > { %1558 = vmatprep.subr.bf16.mxu0 %v1557_v23 }
  0x43   : > { %1588 = vmatpush3.bf16.msra.mxu1 %v1585_v32 }
  0x44   : > { %557 = vmatmul.mubr.f32.gmra.mrb[14].mxu0 %v326_v59  ;;  %1590 = vmatprep.subr.bf16.mxu1 %v1589_v37 }
  0x45   : > { %1560 = vmatpush3.bf16.msra.mxu0 %v1559_v27 }
  0x47   : > { %1592 = vmatpush3.bf16.msra.mxu1 %v1589_v37 }
  0xfb   : > { %v1249_v39 = vpop.f32.mrb[0].mxu0 }
  0xfc   : > { %v1250_v40 = vpop.f32.mrb[1].mxu0 }
  0xfd   : > { %v1411_v41 = vpop.f32.mrb[0].mxu1  ;;  %v1251_v42 = vadd.f32 %v1250_v40, %v1249_v39 }
  0xfe   : > { %v628_v43 = vpop.f32.mrb[1].mxu1 }
  0xff   : > { %v629_v47 = vadd.f32 %v1251_v42, %v628_v43  ;;  %v1252_v48 = vpop.f32.mrb[2].mxu0 }
 0x100   : > { %v1253_v51 = vpop.f32.mrb[3].mxu0 }
 0x101   : > { %v1414_v53 = vpop.f32.mrb[2].mxu1  ;;  %v672_v55 = vmul.f32 %v2070_v46, %v629_v47  ;;  %v1254_v56 = vadd.f32 %v1253_v51, %v1252_v48 }
 0x102   : > { %v638_v58 = vpop.f32.mrb[3].mxu1 }
 0x103   : > { %v634_v59 = vadd.f32 %v1411_v41, %v1254_v56  ;;  %v1255_v60 = vpop.f32.mrb[4].mxu0  ;;  %v685_v61 = vadd.f32 %v2075_v54, %v672_v55 }
 0x104   : > { %v1256_v62 = vpop.f32.mrb[5].mxu0 }
 0x105   : > { %v1417_v0 = vpop.f32.mrb[4].mxu1  ;;  %v673_v1 = vmul.f32 %v2070_v46, %v634_v59  ;;  %v1257_v2 = vadd.f32 %v1256_v62, %v1255_v60  ;;  %v693_v4 = vmax.f32 %v685_v61, 0.0 }
 0x106   : > { %v648_v5 = vpop.f32.mrb[5].mxu1 }
 0x107   : > { %v639_v6 = vadd.f32 %v1257_v2, %v638_v58  ;;  %v1258_v7 = vpop.f32.mrb[6].mxu0  ;;  %v709_v8 = vrot.slane %v693_v4, 7  ;;  %886 = vmatprep.mubr.f32.mxu0 %v693_v4  ;;  %v686_v9 = vadd.f32 %v2075_v54, %v673_v1  ;;  %v741_v20 = vrot.slane %v693_v4, 1 }
 0x108   : > { %v1259_v10 = vpop.f32.mrb[7].mxu0 }
 0x109   : > { %v2081_v11 = vpop.f32.mrb[6].mxu1  ;;  %v674_v12 = vmul.f32 %v2070_v46, %v639_v6  ;;  %v1260_v13 = vadd.f32 %v1259_v10, %v1258_v7  ;;  %v732_v14 = vsel %vm311_vm1, 0.0, %v709_v8  ;;  %v694_v16 = vmax.f32 %v686_v9, 0.0 }
 0x10a   : > { %v658_v18 = vpop.f32.mrb[7].mxu1  ;;  %1205 = vmatmul.mubr.msk.f32.vlgmr.msra.gmra.mrb[16].mxu0 %vm1844_vm2, %v732_v14 }
 0x10b   : > { %v644_v21 = vadd.f32 %v1414_v53, %v1260_v13  ;;  %v1261_v23 = vpop.f32.mrb[8].mxu0  ;;  %891 = vmatprep.mubr.f32.mxu0 %v694_v16  ;;  %v710_v24 = vrot.slane %v694_v16, 7  ;;  %v742_v25 = vrot.slane %v694_v16, 1  ;;  %v687_v26 = vadd.f32 %v2075_v54, %v674_v12 }
 0x10c   : > { %v1262_v27 = vpop.f32.mrb[9].mxu0 }
 0x10d   : > { %v675_v28 = vmul.f32 %v2070_v46, %v644_v21  ;;  %v1263_v30 = vadd.f32 %v1262_v27, %v1261_v23  ;;  %v711_v31 = vsel %vm311_vm1, %v709_v8, %v710_v24  ;;  %v743_v32 = vsel %vm360_vm0, %v741_v20, %v742_v25 }
 0x10e   : > { %892 = vmatmul.mubr.f32.gmra.mrb[18].mxu0 %v711_v31  ;;  %1453 = vmatprep.mubr.f32.mxu1 %v743_v32  ;;  %v695_v33 = vmax.f32 %v687_v26, 0.0 }
 0x10f   : > { %v649_v34 = vadd.f32 %v1263_v30, %v648_v5  ;;  %v1264_v36 = vpop.f32.mrb[10].mxu0  ;;  %v688_v37 = vadd.f32 %v2075_v54, %v675_v28 }
 0x110   : > { %v744_v39 = vrot.slane %v695_v33, 1  ;;  %896 = vmatprep.mubr.f32.mxu0 %v695_v33  ;;  %v1265_v40 = vpop.f32.mrb[11].mxu0  ;;  %v712_v41 = vrot.slane %v695_v33, 7 }
 0x111   : > { %v676_v42 = vmul.f32 %v2070_v46, %v649_v34  ;;  %v1266_v43 = vadd.f32 %v1265_v40, %v1264_v36  ;;  %v696_v47 = vmax.f32 %v688_v37, 0.0 }
 0x112   : > { %v713_v48 = vsel %vm311_vm1, %v710_v24, %v712_v41  ;;  %v745_v51 = vsel %vm360_vm0, %v742_v25, %v744_v39 }
 0x113   : > { %v654_v53 = vadd.f32 %v1417_v0, %v1266_v43  ;;  %1206 = vmatmul.mubr.msk.f32.gmra.mrb[20].mxu0 %vm1930_vm5, %v713_v48  ;;  %1454 = vmatmul.mubr.msk.f32.vlgmr.msra.gmra.mrb[8].mxu1 %vm1867_vm3, %v745_v51  ;;  %v1267_v55 = vpop.f32.mrb[12].mxu0  ;;  %v714_v56 = vrot.slane %v696_v47, 7  ;;  %v746_v58 = vrot.slane %v696_v47, 1  ;;  %v689_v59 = vadd.f32 %v2075_v54, %v676_v42 }
 0x114   : > { %901 = vmatprep.mubr.f32.mxu0 %v696_v47  ;;  %v1268_v60 = vpop.f32.mrb[13].mxu0 }
 0x115   : > { %v677_v61 = vmul.f32 %v2070_v46, %v654_v53  ;;  %v1269_v62 = vadd.f32 %v1268_v60, %v1267_v55  ;;  %v715_v1 = vsel %vm311_vm1, %v712_v41, %v714_v56  ;;  %v747_v0 = vsel %vm360_vm0, %v744_v39, %v746_v58  ;;  %v2131_v41 = vld [vmem:[%s2182_s2 + $0x2] ss:$0 sm:$0xff] }
 0x116   : > { %1456 = vmatprep.mubr.f32.mxu1 %v747_v0  ;;  %v697_v17 = vmax.f32 %v689_v59, 0.0 }
 0x117   : > { %v659_v2 = vadd.f32 %v1269_v62, %v658_v18  ;;  %902 = vmatmul.mubr.f32.gmra.mrb[22].mxu0 %v715_v1  ;;  %v1270_v44 = vpop.f32.mrb[14].mxu0  ;;  %v690_v4 = vadd.f32 %v2075_v54, %v677_v61 }
 0x118   : > { %906 = vmatprep.mubr.f32.mxu0 %v697_v17  ;;  %v1271_v5 = vpop.f32.mrb[15].mxu0  ;;  %v716_v6 = vrot.slane %v697_v17, 7  ;;  %v748_v7 = vrot.slane %v697_v17, 1 }
 0x119   : > { %v678_v8 = vmul.f32 %v2070_v46, %v659_v2  ;;  %v1272_v9 = vadd.f32 %v1271_v5, %v1270_v44  ;;  %v698_v10 = vmax.f32 %v690_v4, 0.0 }
 0x11a   : > { %v717_v12 = vsel %vm311_vm1, %v714_v56, %v716_v6  ;;  %v749_v13 = vsel %vm360_vm0, %v746_v58, %v748_v7 }
 0x11b   : > { %v664_v14 = vadd.f32 %v2081_v11, %v1272_v9  ;;  %1207 = vmatmul.mubr.msk.f32.gmra.mrb[24].mxu0 %vm1976_vm8, %v717_v12  ;;  %1457 = vmatmul.mubr.msk.f32.gmra.mrb[10].mxu1 %vm1902_vm4, %v749_v13  ;;  %v718_v16 = vrot.slane %v698_v10, 7  ;;  %v750_v18 = vrot.slane %v698_v10, 1  ;;  %v691_v20 = vadd.f32 %v2075_v54, %v678_v8 }
 0x11c   : > { %911 = vmatprep.mubr.f32.mxu0 %v698_v10 }
 0x11d   : > { %v679_v21 = vmul.f32 %v2070_v46, %v664_v14  ;;  %v719_v23 = vsel %vm311_vm1, %v716_v6, %v718_v16  ;;  %v751_v24 = vsel %vm360_vm0, %v748_v7, %v750_v18  ;;  %v699_v25 = vmax.f32 %v691_v20, 0.0 }
 0x11e   : > { %1459 = vmatprep.mubr.f32.mxu1 %v751_v24 }
 0x11f   : > { %912 = vmatmul.mubr.f32.gmra.mrb[26].mxu0 %v719_v23  ;;  %v720_v11 = vrot.slane %v699_v25, 7  ;;  %v752_v45 = vrot.slane %v699_v25, 1  ;;  %v692_v26 = vadd.f32 %v2075_v54, %v679_v21 }
 0x120   : > { %916 = vmatprep.mubr.f32.mxu0 %v699_v25 }
 0x121   : > { %v721_v63 = vsel %vm311_vm1, %v718_v16, %v720_v11  ;;  %v753_v27 = vsel %vm360_vm0, %v750_v18, %v752_v45  ;;  %v700_v28 = vmax.f32 %v692_v26, 0.0 }
 0x122   : > { %1460 = vmatmul.mubr.msk.f32.gmra.mrb[12].mxu1 %vm1939_vm6, %v753_v27 }
 0x123   : > { %1208 = vmatmul.mubr.msk.f32.gmra.mrb[28].mxu0 %vm1991_vm9, %v721_v63  ;;  %v722_v46 = vrot.slane %v700_v28, 7  ;;  %v754_v30 = vrot.slane %v700_v28, 1 }
 0x124   : > { %921 = vmatprep.mubr.f32.mxu0 %v700_v28 }
 0x125   : > { %v723_v31 = vsel %vm311_vm1, %v720_v11, %v722_v46  ;;  %v755_v32 = vsel %vm360_vm0, %v752_v45, %v754_v30  ;;  %v764_v54 = vsel %vm360_vm0, %v754_v30, 0.0 }
 0x126   : > { %1462 = vmatprep.mubr.f32.mxu1 %v755_v32 }
 0x127   : > { %922 = vmatmul.mubr.f32.gmra.mrb[30].mxu0 %v723_v31  ;;  %1463 = vmatmul.mubr.msk.f32.gmra.mrb[14].mxu1 %vm1964_vm7, %v764_v54 }
 0x1dd   : > { %v1329_v33 = vpop.f32.mrb[16].mxu0 }
 0x1de   : > { %v1330_v22 = vpop.f32.mrb[17].mxu0 }
 0x1df   : > { %v1331_v34 = vadd.f32 %v1330_v22, %v1329_v33 }
 0x1e1   : > { %v1332_v36 = vpop.f32.mrb[18].mxu0 }
 0x1e2   : > { %v1333_v3 = vpop.f32.mrb[19].mxu0 }
 0x1e3   : > { %v1334_v37 = vadd.f32 %v1333_v3, %v1332_v36 }
 0x1e6   : > { %v1335_v39 = vpop.f32.mrb[20].mxu0  ;;  %v1455_v40 = vpop.f32.mrb[8].mxu1 }
 0x1e7   : > { %v999_v42 = vadd.f32 %v1455_v40, %v1334_v37  ;;  %v1336_v43 = vpop.f32.mrb[21].mxu0  ;;  %v993_v47 = vpop.f32.mrb[9].mxu1 }
 0x1e8   : > { %v1337_v48 = vadd.f32 %v1336_v43, %v1335_v39  ;;  %v994_v51 = vadd.f32 %v1331_v34, %v993_v47 }
 0x1e9   : > { %v1038_v53 = vmul.f32 %v2131_v41, %v999_v42 }
 0x1ea   : > { %v1037_v55 = vmul.f32 %v2131_v41, %v994_v51  ;;  %v1338_v56 = vpop.f32.mrb[22].mxu0 }
 0x1eb   : > { %v1051_v58 = vadd.f32 %v2136_v38, %v1038_v53  ;;  %v1339_v59 = vpop.f32.mrb[23].mxu0 }
 0x1ec   : > { %v1050_v60 = vadd.f32 %v2136_v38, %v1037_v55  ;;  %v1340_v61 = vadd.f32 %v1339_v59, %v1338_v56 }
 0x1ed   : > { %v1059_v62 = vadd.f32 %v1051_v58, %v1759_v50 }
 0x1ee   : > { %v1058_v1 = vadd.f32 %v1050_v60, %v1756_v49  ;;  %v1341_v0 = vpop.f32.mrb[24].mxu0  ;;  %v1458_v17 = vpop.f32.mrb[10].mxu1 }
 0x1ef   : > { %v1067_v2 = vmax.f32 %v1059_v62, 0.0  ;;  %v1009_v44 = vadd.f32 %v1458_v17, %v1340_v61  ;;  %v1342_v4 = vpop.f32.mrb[25].mxu0  ;;  %v1003_v5 = vpop.f32.mrb[11].mxu1 }
 0x1f0   : > { %v1066_v6 = vmax.f32 %v1058_v1, 0.0  ;;  %v1343_v7 = vadd.f32 %v1342_v4, %v1341_v0  ;;  %v1004_v8 = vadd.f32 %v1337_v48, %v1003_v5 }
 0x1f1   : > { %1075 = vst [vmem:[%s2148_s29 + $0x8] sm:$0xff] %v1067_v2  ;;  %v1040_v50 = vmul.f32 %v2131_v41, %v1009_v44 }
 0x1f2   : > { %1074 = vst [vmem:[%s2148_s29] sm:$0xff] %v1066_v6  ;;  %v1039_v9 = vmul.f32 %v2131_v41, %v1004_v8  ;;  %v1344_v10 = vpop.f32.mrb[26].mxu0 }
 0x1f3   : > { %v1053_v12 = vadd.f32 %v2136_v38, %v1040_v50  ;;  %v1345_v49 = vpop.f32.mrb[27].mxu0 }
 0x1f4   : > { %v1052_v13 = vadd.f32 %v2136_v38, %v1039_v9  ;;  %v1346_v14 = vadd.f32 %v1345_v49, %v1344_v10 }
 0x1f5   : > { %v1061_v16 = vadd.f32 %v1053_v12, %v1823_v19  ;;  %v1461_v18 = vpop.f32.mrb[12].mxu1 }
 0x1f6   : > { %v1060_v20 = vadd.f32 %v1052_v13, %v1813_v15  ;;  %v1347_v21 = vpop.f32.mrb[28].mxu0  ;;  %v1019_v23 = vadd.f32 %v1461_v18, %v1346_v14  ;;  %v1013_v24 = vpop.f32.mrb[13].mxu1 }
 0x1f7   : > { %v1069_v25 = vmax.f32 %v1061_v16, 0.0  ;;  %v1348_v11 = vpop.f32.mrb[29].mxu0  ;;  %v1014_v45 = vadd.f32 %v1343_v7, %v1013_v24 }
 0x1f8   : > { %v1068_v26 = vmax.f32 %v1060_v20, 0.0  ;;  %v1042_v63 = vmul.f32 %v2131_v41, %v1019_v23  ;;  %v1349_v27 = vadd.f32 %v1348_v11, %v1347_v21 }
 0x1f9   : > { %1077 = vst [vmem:[%s2148_s29 + $0x18] sm:$0xff] %v1069_v25  ;;  %v1041_v28 = vmul.f32 %v2131_v41, %v1014_v45 }
 0x1fa   : > { %1076 = vst [vmem:[%s2148_s29 + $0x10] sm:$0xff] %v1068_v26  ;;  %v1055_v19 = vadd.f32 %v2136_v38, %v1042_v63  ;;  %v1350_v46 = vpop.f32.mrb[30].mxu0  ;;  %v1464_v15 = vpop.f32.mrb[14].mxu1 }
 0x1fb   : > { %v1054_v30 = vadd.f32 %v2136_v38, %v1041_v28  ;;  %v1351_v31 = vpop.f32.mrb[31].mxu0  ;;  %v1023_v32 = vpop.f32.mrb[15].mxu1 }
 0x1fc   : > { %v1063_v54 = vadd.f32 %v1055_v19, %v1850_v35  ;;  %v1352_v33 = vadd.f32 %v1351_v31, %v1350_v46  ;;  %v1024_v22 = vadd.f32 %v1349_v27, %v1023_v32 }
 0x1fd   : > { %v1062_v34 = vadd.f32 %v1054_v30, %v1836_v29 }
 0x1fe   : > { %v1071_v36 = vmax.f32 %v1063_v54, 0.0  ;;  %v1029_v3 = vadd.f32 %v1464_v15, %v1352_v33  ;;  %v1043_v37 = vmul.f32 %v2131_v41, %v1024_v22 }
 0x1ff   : > { %v1070_v39 = vmax.f32 %v1062_v34, 0.0 }
 0x200   : > { %1079 = vst [vmem:[%s2148_s29 + $0x28] sm:$0xff] %v1071_v36  ;;  %v1044_v40 = vmul.f32 %v2131_v41, %v1029_v3  ;;  %v1056_v42 = vadd.f32 %v2136_v38, %v1043_v37 }
 0x201   : > { %1078 = vst [vmem:[%s2148_s29 + $0x20] sm:$0xff] %v1070_v39 }
 0x202   : > { %v1057_v43 = vadd.f32 %v2136_v38, %v1044_v40  ;;  %v1064_v35 = vadd.f32 %v1056_v42, %v1878_v52 }
 0x204   : > { %v1065_v47 = vadd.f32 %v1057_v43, %v1889_v57  ;;  %v1072_v48 = vmax.f32 %v1064_v35, 0.0 }
 0x206   : > { %v1073_v51 = vmax.f32 %v1065_v47, 0.0  ;;  %1080 = vst [vmem:[%s2148_s29 + $0x30] sm:$0xff] %v1072_v48 }
 0x208   : > { %1081 = vst [vmem:[%s2148_s29 + $0x38] sm:$0xff] %v1073_v51 }
 0x209 PF: > { %s13_s12 = sadd.s32 1, %s1607_s12  }
 0x20a   : > { %p10_p4 = scmp.ge.s32.totalorder %s13_s12, 4  }
 0x20c   :  { %12 = sbr.rel (!%p10_p4) target bundleno = 1 (0x1), region = 63 }

</bundles_post_ra>
